<compile_context>
chip_gen: v7x
topology: tpu7x:2x2x1
jax: 0.10.0
libtpu: 0.0.40
codegen_flags: <defaults>
</compile_context>

<pallas_src>
import functools

import jax
import jax.numpy as jnp
from jax import lax
from jax.experimental import pallas as pl
from jax.experimental.pallas import tpu as pltpu


def _smooth_ml_kernel(tgt_ref, logp_ref, out_ref, *, tv):
    """Accumulate per-row-block partial sums into a lane-dense (1, 8, 128) slab.

    out_ref[0, 0, 0] = sum(-logp[r, target[r]] * mask[r])   over this row block
    out_ref[0, 0, 1] = sum(-sum_v logp[r, v]   * mask[r])   over this row block
    out_ref[0, 0, 2] = sum(mask[r])                         over this row block
    """
    j = pl.program_id(1)                                   # vocab-tile index

    tgt = tgt_ref[...]                                     # (TR, 1) int32
    logp = logp_ref[...].astype(jnp.float32)               # (TR, TV) f32

    # mask = (target > th_mask).float(), th_mask == 1
    mask = (tgt > 1).astype(jnp.float32)                   # (TR, 1)

    # gather logp[row, target[row]] restricted to this vocab tile
    # (targets outside this tile simply never match the local iota)
    tgt_local = tgt - j * tv                               # (TR, 1)
    col = lax.broadcasted_iota(jnp.int32, logp.shape, 1)   # (TR, TV)
    onehot = col == tgt_local
    picked = jnp.sum(jnp.where(onehot, logp, 0.0), axis=1, keepdims=True)  # (TR,1)

    ml_part = jnp.sum(-picked * mask)                      # scalar
    rowsum = jnp.sum(logp, axis=1, keepdims=True)          # (TR, 1)
    sm_part = jnp.sum(-rowsum * mask)                      # scalar
    # mask sum must be counted exactly once per row -> only on first vocab tile
    msk_part = jnp.where(j == 0, jnp.sum(mask), 0.0)       # scalar

    # pack the three scalars into a lane-dense slab (row 0, lanes 0..2)
    sub = lax.broadcasted_iota(jnp.int32, out_ref.shape, 1)
    lane = lax.broadcasted_iota(jnp.int32, out_ref.shape, 2)
    row0 = sub == 0
    slab = (jnp.where(row0 & (lane == 0), ml_part, 0.0)
            + jnp.where(row0 & (lane == 1), sm_part, 0.0)
            + jnp.where(row0 & (lane == 2), msk_part, 0.0))

    @pl.when(j == 0)
    def _():
        out_ref[...] = jnp.zeros_like(out_ref)

    out_ref[...] += slab


def _round_up(x, m):
    return ((x + m - 1) // m) * m


def _pick_tile(total, cap, quantum):
    """Largest multiple of `quantum` that is <= cap and evenly divides `total`."""
    start = (min(cap, total) // quantum) * quantum
    for cand in range(start, 0, -quantum):
        if total % cand == 0:
            return cand
    return None


@functools.partial(jax.jit, static_argnames=("eps", "norm", "block_bytes"))
def smooth_ml_criterion(logp, target, *, eps=0.1, norm=True,
                        block_bytes=8 * 1024 * 1024):
    """Pallas implementation of SmoothMLCriterion.forward.

    logp:   (N, S, V) log-probabilities (f32 or bf16).
    target: (N, S_t) integer labels with S_t >= S (sliced to S like the reference).
    Returns ({'final': scalar, 'ml': scalar}, {}).
    """
    N, S, V = logp.shape
    target = target[:, :S]

    R = N * S
    logp_flat = logp.reshape(R, V)                 # keep input dtype
    tgt_flat = target.reshape(R, 1).astype(jnp.int32)
    elt = logp_flat.dtype.itemsize

    # ---- tile selection -----------------------------------------------------
    # Row tile: up to 256 rows, preferring a divisor of R (avoids padding copies).
    TR = _pick_tile(R, 256, 8)
    if TR is None:
        TR = min(256, _round_up(R, 8))
    R_pad = _round_up(R, TR)

    # Vocab tile: largest multiple of 128 such that one logp block stays within
    # `block_bytes` (default 8 MiB -> 16 MiB double-buffered; safe on v7x).
    tv_cap = max(128, (block_bytes // (TR * elt)) // 128 * 128)
    if V <= tv_cap:
        TV, V_pad = V, V
    else:
        TV = _pick_tile(V, tv_cap, 128)
        if TV is None:
            TV = tv_cap
        V_pad = _round_up(V, TV)

    # Pad only if needed; padded labels are 0 -> mask 0 -> contribute nothing,
    # padded logp entries are 0 -> no effect on gather or row sums.
    if R_pad != R or V_pad != V:
        logp_flat = jnp.pad(logp_flat, ((0, R_pad - R), (0, V_pad - V)))
    if R_pad != R:
        tgt_flat = jnp.pad(tgt_flat, ((0, R_pad - R), (0, 0)))

    n_row_blocks = R_pad // TR
    n_v_blocks = V_pad // TV
    grid = (n_row_blocks, n_v_blocks)

    # TODO(synk): targets >= V silently contribute 0 to the gather (the PyTorch
    # reference would raise); assumed in-range as in training pipelines.
    out = pl.pallas_call(
        functools.partial(_smooth_ml_kernel, tv=TV),
        out_shape=jax.ShapeDtypeStruct((n_row_blocks, 8, 128), jnp.float32),
        grid_spec=pltpu.PrefetchScalarGridSpec(
            num_scalar_prefetch=0,
            grid=grid,
            in_specs=[
                # target rows: constant across the vocab axis (one fetch per row block)
                pl.BlockSpec((TR, 1), lambda i, j: (i, 0)),
                # logp tile
                pl.BlockSpec((TR, TV), lambda i, j: (i, j)),
            ],
            # per-row-block lane-dense partials, resident across the vocab axis
            out_specs=pl.BlockSpec((1, 8, 128), lambda i, j: (i, 0, 0)),
        ),
        compiler_params=pltpu.CompilerParams(
            dimension_semantics=("parallel", "arbitrary"),
            vmem_limit_bytes=48 * 1024 * 1024,
        ),
        cost_estimate=pl.CostEstimate(
            flops=int(5 * R_pad * V_pad),
            transcendentals=0,
            bytes_accessed=int(R_pad * V_pad * elt + R_pad * 4
                               + n_row_blocks * 8 * 128 * 4),
        ),
    )(tgt_flat, logp_flat)

    partials = jnp.sum(out, axis=(0, 1))           # (128,)  lanes 0..2 hold the sums
    ml_output = partials[0]
    smooth_loss = partials[1] / V                  # divide by logp.size(1) after view(-1, V)
    mask_total = partials[2]

    if norm:
        ml_output = ml_output / mask_total
        smooth_loss = smooth_loss / mask_total

    output = (1.0 - eps) * ml_output + eps * smooth_loss
    return ({"final": output, "ml": ml_output}, {})


def _reference(logp, target, eps=0.1, norm=True):
    """Pure-JAX reference mirroring the PyTorch code."""
    N, S, V = logp.shape
    target = target[:, :S]
    mask = (target > 1).astype(jnp.float32)
    lp = logp.reshape(-1, V).astype(jnp.float32)
    t = target.reshape(-1)
    m = mask.reshape(-1)
    ml = jnp.sum(-lp[jnp.arange(lp.shape[0]), t] * m)
    sm = jnp.sum(-jnp.sum(lp, axis=1) * m) / V
    if norm:
        denom = jnp.sum(mask)
        ml = ml / denom
        sm = sm / denom
    out = (1.0 - eps) * ml + eps * sm
    return out, ml


if __name__ == "__main__":
    # Deterministic "parameters": label_smoothing eps (from params dict in __init__).
    EPS = 0.1
    key = jax.random.PRNGKey(0)
    k1, k2, k3, k4 = jax.random.split(key, 4)

    # Config 1: small, single-tile path (N=2, S=8, V=128), with masked tokens.
    N, S, V = 2, 8, 128
    logits = jax.random.normal(k1, (N, S, V), dtype=jnp.float32)
    logp = jax.nn.log_softmax(logits, axis=-1)
    target = jax.random.randint(k2, (N, S), 2, V, dtype=jnp.int32)
    target = target.at[0, 0].set(0).at[0, 1].set(1)       # exercise th_mask masking

    losses, _ = smooth_ml_criterion(logp, target, eps=EPS, norm=True)
    final = jax.block_until_ready(losses["final"])
    ml = jax.block_until_ready(losses["ml"])
    ref_final, ref_ml = _reference(logp, target, eps=EPS, norm=True)
    assert jnp.allclose(final, ref_final, rtol=1e-5, atol=1e-5), (final, ref_final)
    assert jnp.allclose(ml, ref_ml, rtol=1e-5, atol=1e-5), (ml, ref_ml)

    # Config 2: exercises row padding + vocab tiling (tiny block budget on purpose).
    N2, S2, V2 = 2, 5, 384
    logits2 = jax.random.normal(k3, (N2, S2, V2), dtype=jnp.float32)
    logp2 = jax.nn.log_softmax(logits2, axis=-1)
    target2 = jax.random.randint(k4, (N2, S2), 2, V2, dtype=jnp.int32)
    losses2, _ = smooth_ml_criterion(logp2, target2, eps=EPS, norm=True,
                                     block_bytes=16 * 1024)
    final2 = jax.block_until_ready(losses2["final"])
    ml2 = jax.block_until_ready(losses2["ml"])
    ref_final2, ref_ml2 = _reference(logp2, target2, eps=EPS, norm=True)
    assert jnp.allclose(final2, ref_final2, rtol=1e-5, atol=1e-5), (final2, ref_final2)
    assert jnp.allclose(ml2, ref_ml2, rtol=1e-5, atol=1e-5), (ml2, ref_ml2)

    print("KERNEL_OK")
</pallas_src>

<mosaic_0001>
module attributes {stable_mosaic.version = 11 : i64} {
  func.func @_smooth_ml_kernel(%arg0: i32, %arg1: i32, %arg2: memref<16x1xi32, #tpu.memory_space<vmem>>, %arg3: memref<16x128xf32, #tpu.memory_space<vmem>>, %arg4: memref<1x8x128xf32, #tpu.memory_space<vmem>>) attributes {dimension_semantics = [#tpu.dimension_semantics<parallel>, #tpu.dimension_semantics<arbitrary>], iteration_bounds = array<i64: 1, 1>, scalar_prefetch = 0 : i64, scratch_operands = 0 : i64, tpu.core_type = #tpu.core_type<tc>, window_params = [{transform_indices = @transform_0, window_bounds = array<i64: 16, 1>}, {transform_indices = @transform_1, window_bounds = array<i64: 16, 128>}, {transform_indices = @transform_2, window_bounds = array<i64: 1, 8, 128>}]} {
    %c0 = arith.constant 0 : index
    %c0_0 = arith.constant 0 : index
    %0 = vector.load %arg2[%c0, %c0_0] : memref<16x1xi32, #tpu.memory_space<vmem>>, vector<16x1xi32>
    %c0_1 = arith.constant 0 : index
    %c0_2 = arith.constant 0 : index
    %1 = vector.load %arg3[%c0_1, %c0_2] : memref<16x128xf32, #tpu.memory_space<vmem>>, vector<16x128xf32>
    %c1_i32 = arith.constant 1 : i32
    %2 = vector.broadcast %c1_i32 : i32 to vector<16x1xi32>
    %3 = arith.cmpi sgt, %0, %2 : vector<16x1xi32>
    %4 = arith.extui %3 : vector<16x1xi1> to vector<16x1xi32>
    %5 = arith.sitofp %4 : vector<16x1xi32> to vector<16x1xf32>
    %c128_i32 = arith.constant 128 : i32
    %6 = arith.muli %arg1, %c128_i32 : i32
    %7 = vector.broadcast %6 : i32 to vector<16x1xi32>
    %8 = arith.subi %0, %7 : vector<16x1xi32>
    %9 = tpu.iota {dimensions = array<i32: 1>} : vector<16x128xi32>
    %10 = vector.broadcast %8 : vector<16x1xi32> to vector<16x128xi32>
    %11 = arith.cmpi eq, %9, %10 : vector<16x128xi32>
    %cst = arith.constant 0.000000e+00 : f32
    %12 = vector.broadcast %cst : f32 to vector<16x128xf32>
    %13 = arith.select %11, %1, %12 : vector<16x128xi1>, vector<16x128xf32>
    %cst_3 = arith.constant dense<0.000000e+00> : vector<16xf32>
    %14 = vector.multi_reduction <add>, %13, %cst_3 [1] : vector<16x128xf32> to vector<16xf32>
    %15 = vector.shape_cast %14 : vector<16xf32> to vector<16x1xf32>
    %cst_4 = arith.constant 0.000000e+00 : f32
    %16 = vector.broadcast %cst_4 : f32 to vector<16x1xf32>
    %17 = arith.subf %16, %15 : vector<16x1xf32>
    %18 = arith.mulf %17, %5 : vector<16x1xf32>
    %19 = vector.shape_cast %18 : vector<16x1xf32> to vector<1x16x1xf32>
    %cst_5 = arith.constant dense<0.000000e+00> : vector<1xf32>
    %20 = vector.multi_reduction <add>, %19, %cst_5 [1, 2] : vector<1x16x1xf32> to vector<1xf32>
    %21 = vector.shape_cast %20 : vector<1xf32> to vector<1x1x1xf32>
    %22 = vector.extract %21[0, 0, 0] : f32 from vector<1x1x1xf32>
    %cst_6 = arith.constant dense<0.000000e+00> : vector<16xf32>
    %23 = vector.multi_reduction <add>, %1, %cst_6 [1] : vector<16x128xf32> to vector<16xf32>
    %24 = vector.shape_cast %23 : vector<16xf32> to vector<16x1xf32>
    %cst_7 = arith.constant 0.000000e+00 : f32
    %25 = vector.broadcast %cst_7 : f32 to vector<16x1xf32>
    %26 = arith.subf %25, %24 : vector<16x1xf32>
    %27 = arith.mulf %26, %5 : vector<16x1xf32>
    %28 = vector.shape_cast %27 : vector<16x1xf32> to vector<1x16x1xf32>
    %cst_8 = arith.constant dense<0.000000e+00> : vector<1xf32>
    %29 = vector.multi_reduction <add>, %28, %cst_8 [1, 2] : vector<1x16x1xf32> to vector<1xf32>
    %30 = vector.shape_cast %29 : vector<1xf32> to vector<1x1x1xf32>
    %31 = vector.extract %30[0, 0, 0] : f32 from vector<1x1x1xf32>
    %c0_i32 = arith.constant 0 : i32
    %32 = arith.cmpi eq, %arg1, %c0_i32 : i32
    %33 = vector.shape_cast %5 : vector<16x1xf32> to vector<1x16x1xf32>
    %cst_9 = arith.constant dense<0.000000e+00> : vector<1xf32>
    %34 = vector.multi_reduction <add>, %33, %cst_9 [1, 2] : vector<1x16x1xf32> to vector<1xf32>
    %35 = vector.shape_cast %34 : vector<1xf32> to vector<1x1x1xf32>
    %36 = vector.extract %35[0, 0, 0] : f32 from vector<1x1x1xf32>
    %cst_10 = arith.constant 0.000000e+00 : f32
    %37 = arith.select %32, %36, %cst_10 : f32
    %38 = tpu.iota {dimensions = array<i32: 1>} : vector<1x8x128xi32>
    %39 = tpu.iota {dimensions = array<i32: 2>} : vector<1x8x128xi32>
    %c0_i32_11 = arith.constant 0 : i32
    %40 = vector.broadcast %c0_i32_11 : i32 to vector<1x8x128xi32>
    %41 = arith.cmpi eq, %38, %40 : vector<1x8x128xi32>
    %c0_i32_12 = arith.constant 0 : i32
    %42 = vector.broadcast %c0_i32_12 : i32 to vector<1x8x128xi32>
    %43 = arith.cmpi eq, %39, %42 : vector<1x8x128xi32>
    %44 = arith.andi %41, %43 : vector<1x8x128xi1>
    %cst_13 = arith.constant 0.000000e+00 : f32
    %45 = vector.broadcast %22 : f32 to vector<1x8x128xf32>
    %46 = vector.broadcast %cst_13 : f32 to vector<1x8x128xf32>
    %47 = arith.select %44, %45, %46 : vector<1x8x128xi1>, vector<1x8x128xf32>
    %c1_i32_14 = arith.constant 1 : i32
    %48 = vector.broadcast %c1_i32_14 : i32 to vector<1x8x128xi32>
    %49 = arith.cmpi eq, %39, %48 : vector<1x8x128xi32>
    %50 = arith.andi %41, %49 : vector<1x8x128xi1>
    %cst_15 = arith.constant 0.000000e+00 : f32
    %51 = vector.broadcast %31 : f32 to vector<1x8x128xf32>
    %52 = vector.broadcast %cst_15 : f32 to vector<1x8x128xf32>
    %53 = arith.select %50, %51, %52 : vector<1x8x128xi1>, vector<1x8x128xf32>
    %54 = arith.addf %47, %53 : vector<1x8x128xf32>
    %c2_i32 = arith.constant 2 : i32
    %55 = vector.broadcast %c2_i32 : i32 to vector<1x8x128xi32>
    %56 = arith.cmpi eq, %39, %55 : vector<1x8x128xi32>
    %57 = arith.andi %41, %56 : vector<1x8x128xi1>
    %cst_16 = arith.constant 0.000000e+00 : f32
    %58 = vector.broadcast %37 : f32 to vector<1x8x128xf32>
    %59 = vector.broadcast %cst_16 : f32 to vector<1x8x128xf32>
    %60 = arith.select %57, %58, %59 : vector<1x8x128xi1>, vector<1x8x128xf32>
    %61 = arith.addf %54, %60 : vector<1x8x128xf32>
    %c0_i32_17 = arith.constant 0 : i32
    %62 = arith.cmpi eq, %arg1, %c0_i32_17 : i32
    %63 = arith.extui %62 : i1 to i32
    %c0_i32_18 = arith.constant 0 : i32
    %64 = arith.cmpi ne, %63, %c0_i32_18 : i32
    scf.if %64 {
      %cst_25 = arith.constant 0.000000e+00 : f32
      %68 = vector.broadcast %cst_25 : f32 to vector<1x8x128xf32>
      %c0_26 = arith.constant 0 : index
      %c0_27 = arith.constant 0 : index
      %c0_28 = arith.constant 0 : index
      %69 = vector.load %arg4[%c0_26, %c0_27, %c0_28] : memref<1x8x128xf32, #tpu.memory_space<vmem>>, vector<1x8x128xf32>
      tpu.vector_store %arg4[%c0_26, %c0_27, %c0_28], %68 {strides = array<i32>} : memref<1x8x128xf32, #tpu.memory_space<vmem>>, vector<1x8x128xf32>,
    } else {
    }
    %c0_19 = arith.constant 0 : index
    %c0_20 = arith.constant 0 : index
    %c0_21 = arith.constant 0 : index
    %65 = vector.load %arg4[%c0_19, %c0_20, %c0_21] : memref<1x8x128xf32, #tpu.memory_space<vmem>>, vector<1x8x128xf32>
    %66 = arith.addf %65, %61 : vector<1x8x128xf32>
    %c0_22 = arith.constant 0 : index
    %c0_23 = arith.constant 0 : index
    %c0_24 = arith.constant 0 : index
    %67 = vector.load %arg4[%c0_22, %c0_23, %c0_24] : memref<1x8x128xf32, #tpu.memory_space<vmem>>, vector<1x8x128xf32>
    tpu.vector_store %arg4[%c0_22, %c0_23, %c0_24], %66 {strides = array<i32>} : memref<1x8x128xf32, #tpu.memory_space<vmem>>, vector<1x8x128xf32>,
    return
  }
  func.func @transform_0(%arg0: i32, %arg1: i32) -> (i32, i32) {
    %c0_i32 = arith.constant 0 : i32
    %c0_i32_0 = arith.constant 0 : i32
    return %arg0, %c0_i32 : i32, i32
  }
  func.func @transform_1(%arg0: i32, %arg1: i32) -> (i32, i32) {
    %c0_i32 = arith.constant 0 : i32
    return %arg0, %arg1 : i32, i32
  }
  func.func @transform_2(%arg0: i32, %arg1: i32) -> (i32, i32, i32) {
    %c0_i32 = arith.constant 0 : i32
    %c0_i32_0 = arith.constant 0 : i32
    %c0_i32_1 = arith.constant 0 : i32
    return %arg0, %c0_i32, %c0_i32_0 : i32, i32, i32
  }
}

</mosaic_0001>

<bundles_post_ra>
// kernel: smooth_ml_criterion.1
= control target key start
LH: loop header
LB: loop body
LE: loop exit
PB: predicated region body
PF: predicated region fallthrough
CT: control target
= control target key end

     0   :  { %v131_v0 = vmov 0   ;;  %v25_v4 = vlaneseq  ;;  %v132_v11 = vmov 0.0   ;;  %vm45_vm4 = vcmask 7168   ;;  %s178_s0 = inlined_call_operand.vmem [shape: s32[16,1], index: 0, kind: input, shape index: {}]   ;;  %s179_s1 = inlined_call_operand.vmem [shape: f32[16,128], index: 1, kind: input, shape index: {}]   ;;  %s180_s2 = inlined_call_operand.vmem [shape: f32[1,8,128], index: 2, kind: output, shape index: {}]  }
   0x1   :  { %130 = vset.pattern.permute.xlu0 %v131_v0  ;;  %v11_v1 = vld [vmem:[%s178_s0] sm:$0xff]  ;;  %v12_v2 = vld [vmem:[%s178_s0 + $0x8] sm:$0xff] }
   0x2   :  { %28 = vperm.xlu0 %130, %v11_v1   ;;  %v13_v3 = vld [vmem:[%s179_s1] sm:$0xff]  ;;  %v158_v5 = vand.u32 127, %v25_v4  ;;  %v14_v8 = vld [vmem:[%s179_s1 + $0x8] sm:$0xff]  ;;  %vm15_vm2 = vcmp.gt.s32.totalorder %v11_v1, 1  ;;  %vm16_vm3 = vcmp.gt.s32.totalorder %v12_v2, 1  ;;  %v93_v56 = vshrl.u32 %v25_v4, 7 }
   0x3   :  { %v120_v12 = vsel %vm15_vm2, 1.0, %v132_v11  ;;  %v121_v13 = vsel %vm16_vm3, 1.0, %v132_v11 }
   0x4   :  { %v79_v14 = vsel %vm45_vm4, %v120_v12, 0.0  ;;  %v80_v15 = vsel %vm45_vm4, %v121_v13, 0.0  ;;  %vm94_vm5 = vcmp.eq.s32.totalorder %v93_v56, 0  ;;  %vm95_vm6 = vcmp.eq.s32.totalorder %v158_v5, 0 }
   0x5   :  { %v81_v16 = vadd.f32 %v80_v15, %v79_v14  ;;  %vm99_vm7 = vcmp.eq.s32.totalorder %v158_v5, 1  ;;  %vm96_vm8 = vmand %vm94_vm5, %vm95_vm6  ;;  %vm104_vm10 = vcmp.eq.s32.totalorder %v158_v5, 2 }
   0x6   :  { %31 = vperm.xlu0 %130, %v12_v2   ;;  %vm100_vm9 = vmand %vm94_vm5, %vm99_vm7 }
   0x7   :  { %vm105_vm11 = vmand %vm94_vm5, %vm104_vm10 }
  0x25   :  { %58 = vadd.xlane.f32.xlu0 %v13_v3 }
  0x81   :  { %v29_v6 = vpop.permute.xlu0 %28 }
  0x82   :  { %vm33_vm0 = vcmp.eq.s32.totalorder %v158_v5, %v29_v6 }
  0x83   :  { %v35_v7 = vsel %vm33_vm0, %v13_v3, 0.0 }
  0x84   :  { %37 = vadd.xlane.f32.xlu1 %v35_v7 }
  0x85   :  { %v32_v9 = vpop.permute.xlu0 %31 }
  0x86   :  { %vm34_vm1 = vcmp.eq.s32.totalorder %v158_v5, %v32_v9 }
  0x87   :  { %v36_v10 = vsel %vm34_vm1, %v14_v8, 0.0 }
  0x88   :  { %39 = vadd.xlane.f32.xlu1 %v36_v10 }
  0x8c   :  { %60 = vadd.xlane.f32.xlu1 %v14_v8 }
  0xb2   :  { %v59_v18 = vpop.xlane.xlu0 %58 }
  0xb3   :  { %v62_v20 = vsub.f32 0.0, %v59_v18 }
  0xb5   :  { %v64_v25 = vmul.f32 %v120_v12, %v62_v20 }
  0xb7   :  { %v66_v32 = vsel %vm45_vm4, %v64_v25, 0.0 }
 0x111   :  { %v38_v17 = vpop.xlane.xlu1 %37 }
 0x112   :  { %v41_v19 = vsub.f32 0.0, %v38_v17 }
 0x114   :  { %v43_v22 = vmul.f32 %v120_v12, %v41_v19 }
 0x115   :  { %v40_v21 = vpop.xlane.xlu1 %39 }
 0x116   :  { %v42_v23 = vsub.f32 0.0, %v40_v21  ;;  %v46_v28 = vsel %vm45_vm4, %v43_v22, 0.0 }
 0x118   :  { %v44_v24 = vmul.f32 %v121_v13, %v42_v23 }
 0x119   :  { %v61_v26 = vpop.xlane.xlu1 %60 }
 0x11a   :  { %v63_v27 = vsub.f32 0.0, %v61_v26  ;;  %v47_v29 = vsel %vm45_vm4, %v44_v24, 0.0 }
 0x11b   :  { %v48_v30 = vadd.f32 %v47_v29, %v46_v28 }
 0x11c   :  { %v65_v31 = vmul.f32 %v121_v13, %v63_v27 }
 0x11e   :  { %v67_v33 = vsel %vm45_vm4, %v65_v31, 0.0 }
 0x11f   :  { %v68_v34 = vadd.f32 %v67_v33, %v66_v32 }
 0x121   :  { %69 = vadd.xlane.f32.xlu1 %v68_v34 }
 0x125   :  { %49 = vadd.xlane.f32.xlu1 %v48_v30 }
 0x129   :  { %82 = vadd.xlane.f32.xlu1 %v81_v16 }
 0x1ae   :  { %v70_v35 = vpop.xlane.xlu1 %69 }
 0x1af   :  { %v71_v36 = vrot.slane %v70_v35, 4 }
 0x1b1   :  { %v72_v37 = vadd.f32 %v71_v36, %v70_v35 }
 0x1b2   :  { %v50_v38 = vpop.xlane.xlu1 %49 }
 0x1b3   :  { %v73_v39 = vrot.slane %v72_v37, 2  ;;  %v51_v40 = vrot.slane %v50_v38, 4 }
 0x1b5   :  { %v52_v41 = vadd.f32 %v51_v40, %v50_v38  ;;  %v74_v43 = vadd.f32 %v73_v39, %v72_v37 }
 0x1b6   :  { %v83_v42 = vpop.xlane.xlu1 %82 }
 0x1b7   :  { %v53_v44 = vrot.slane %v52_v41, 2  ;;  %v84_v45 = vrot.slane %v83_v42, 4  ;;  %v75_v48 = vrot.slane %v74_v43, 1 }
 0x1b9   :  { %v85_v46 = vadd.f32 %v84_v45, %v83_v42  ;;  %v54_v47 = vadd.f32 %v53_v44, %v52_v41  ;;  %v76_v53 = vadd.f32 %v75_v48, %v74_v43 }
 0x1bb   :  { %v86_v49 = vrot.slane %v85_v46, 2  ;;  %v55_v50 = vrot.slane %v54_v47, 1 }
 0x1bd   :  { %v87_v51 = vadd.f32 %v86_v49, %v85_v46  ;;  %v56_v52 = vadd.f32 %v55_v50, %v54_v47 }
 0x1bf   :  { %122 = vpush %v56_v52  ;;  %v88_v54 = vrot.slane %v87_v51, 1 }
 0x1c0   :  { %124 = vpush %v76_v53 }
 0x1c1   :  { %v89_v55 = vadd.f32 %v88_v54, %v87_v51 }
 0x1c3   :  { %126 = vpush %v89_v55 }
 0x1f0   :  { %s123_s0 = spop %122 }
 0x1f1   :  { %v97_v57 = vstv %s123_s0  ;;  %s125_s1 = spop %124 }
 0x1f2   :  { %v98_v58 = vsel %vm96_vm8, %v97_v57, 0.0  ;;  %v101_v59 = vstv %s125_s1 }
 0x1f3   :  { %v102_v60 = vsel %vm100_vm9, %v101_v59, 0.0 }
 0x1f4   :  { %s127_s17 = spop %126  ;;  %v103_v61 = vadd.f32 %v102_v60, %v98_v58 }
 0x1f5   :  { %v106_v62 = vstv %s127_s17 }
 0x1f6   :  { %v107_v63 = vsel %vm105_vm11, %v106_v62, 0.0 }
 0x1f7   :  { %v108_v0 = vadd.f32 %v107_v63, %v103_v61 }
 0x1f9   :  { %115 = vst [vmem:[%s180_s2] sm:$0xff] %v108_v0 }

</bundles_post_ra>
